<compile_context>
chip_gen: v7x
topology: tpu7x:2x2x1
jax: 0.10.0
libtpu: 0.0.40
codegen_flags: <defaults>
</compile_context>

<pallas_src>
import jax
import jax.numpy as jnp
from jax.experimental import pallas as pl
from jax.experimental.pallas import tpu as pltpu


HIDDEN = 32          # hidden_channels in the PyTorch config
FFN_DIM = 1024       # hardcoded in PoswiseFeedForwardNet
LN_EPS = 1e-5        # torch.nn.LayerNorm default
BLOCK_M = 1024       # max row tile (multiple of 8 sublanes); sweepable


# ----------------------------- fused kernel -----------------------------
def _ffn_kernel(x_ref, w1_ref, b1_ref, w2_ref, b2_ref, g_ref, be_ref, o_ref):
    # y = LayerNorm( relu(x @ W1 + b1) @ W2 + b2 + x )
    x = x_ref[...]                                                    # (bm, H) f32
    # MXU matmuls with bf16 operands, f32 accumulation.
    h = jnp.dot(x.astype(jnp.bfloat16), w1_ref[...],
                preferred_element_type=jnp.float32) + b1_ref[...]     # (bm, F) f32
    h = jnp.maximum(h, 0.0)
    y = jnp.dot(h.astype(jnp.bfloat16), w2_ref[...],
                preferred_element_type=jnp.float32) + b2_ref[...]     # (bm, H) f32
    y = y + x                                                         # residual (f32)
    # One-pass LayerNorm statistics: the two cross-lane reductions are independent.
    mean = jnp.mean(y, axis=-1, keepdims=True)
    mean_sq = jnp.mean(y * y, axis=-1, keepdims=True)
    var = jnp.maximum(mean_sq - mean * mean, 0.0)
    norm = (y - mean) * jax.lax.rsqrt(var + LN_EPS)
    o_ref[...] = norm * g_ref[...] + be_ref[...]                      # single store per tile


def _round_up(n, m):
    return (n + m - 1) // m * m


def _choose_tiling(M, block_m):
    """Pick (Mp, bm): padded row count and row-tile size.

    bm is a multiple of 8 (sublanes) and <= block_m. Prefer bm dividing
    round_up(M, 8) so no pad-to-tile copy is needed, and prefer >= 2 (ideally
    an even number of) grid steps so both v7x TensorCores get work.
    """
    Mp = _round_up(M, 8)
    q = Mp // 8
    if q == 1:
        return Mp, 8
    # cap <= block_m rows and guarantees >= 2 grid steps.
    cap = max(1, min(block_m // 8, (q + 1) // 2))
    best, best_even = 1, 0
    for d in range(1, cap + 1):
        if q % d == 0:
            best = d
            if (q // d) % 2 == 0:
                best_even = d
    d = best_even if best_even * 2 >= best else best
    bm = 8 * d
    # Awkward row counts (e.g. prime q): divisors only give tiny tiles ->
    # pad up to a multiple of a big tile instead (one extra copy of x).
    if bm * 8 < 8 * cap and q > 16:
        bm = 8 * cap
        Mp = _round_up(M, bm)
    return Mp, bm


# ----------------------------- wrapper -----------------------------
def poswise_ffn(params, x, *, block_m=BLOCK_M):
    """x: [B, T, H] -> [B, T, H]. Equivalent to PoswiseFeedForwardNet.forward."""
    B, T, H = x.shape
    F = params['w1'].shape[1]
    M = B * T
    xf = x.reshape(M, H).astype(jnp.float32)

    Mp, bm = _choose_tiling(M, block_m)
    if Mp != M:
        xf = jnp.pad(xf, ((0, Mp - M), (0, 0)))
    grid = (Mp // bm,)

    # bf16 weights: halves resident VMEM and weight DMA; accumulation stays f32.
    w1 = params['w1'].astype(jnp.bfloat16)
    w2 = params['w2'].astype(jnp.bfloat16)

    cost = pl.CostEstimate(
        flops=4 * Mp * H * F,                                  # two matmuls
        transcendentals=Mp,                                    # rsqrt per row
        bytes_accessed=4 * (2 * Mp * H + F + 3 * H) + 2 * (2 * H * F))

    out = pl.pallas_call(
        _ffn_kernel,
        out_shape=jax.ShapeDtypeStruct((Mp, H), jnp.float32),
        grid=grid,
        in_specs=[
            pl.BlockSpec((bm, H), lambda i: (i, 0)),           # activations: tiled rows
            pl.BlockSpec((H, F), lambda i: (0, 0)),            # W1 (bf16) resident
            pl.BlockSpec((1, F), lambda i: (0, 0)),            # b1 resident
            pl.BlockSpec((F, H), lambda i: (0, 0)),            # W2 (bf16) resident
            pl.BlockSpec((1, H), lambda i: (0, 0)),            # b2 resident
            pl.BlockSpec((1, H), lambda i: (0, 0)),            # LN gamma
            pl.BlockSpec((1, H), lambda i: (0, 0)),            # LN beta
        ],
        out_specs=pl.BlockSpec((bm, H), lambda i: (i, 0)),
        compiler_params=pltpu.CompilerParams(
            dimension_semantics=("parallel",),
            vmem_limit_bytes=48 * 1024 * 1024),
        cost_estimate=cost,
    )(xf, w1, params['b1'].reshape(1, F), w2,
      params['b2'].reshape(1, H), params['ln_g'].reshape(1, H),
      params['ln_b'].reshape(1, H))

    return out[:M].reshape(B, T, H)


# ----------------------------- pure-JAX reference -----------------------------
def poswise_ffn_ref(params, x):
    h = jnp.maximum(x @ params['w1'] + params['b1'], 0.0)
    y = h @ params['w2'] + params['b2'] + x
    mean = jnp.mean(y, axis=-1, keepdims=True)
    var = jnp.mean(jnp.square(y - mean), axis=-1, keepdims=True)
    return (y - mean) / jnp.sqrt(var + LN_EPS) * params['ln_g'] + params['ln_b']


# ----------------------------- deterministic init -----------------------------
def init_ffn_params(key, hidden=HIDDEN, ffn_dim=FFN_DIM):
    # Conv1d(kernel_size=1) weights [out, in, 1] are stored transposed as [in, out]
    # so the kernel does x @ W directly (same math, no runtime transpose).
    k1, k2, k3, k4 = jax.random.split(key, 4)
    return {
        'w1': jax.random.normal(k1, (hidden, ffn_dim), jnp.float32) * 0.02,
        'b1': jax.random.normal(k2, (ffn_dim,), jnp.float32) * 0.02,
        'w2': jax.random.normal(k3, (ffn_dim, hidden), jnp.float32) * 0.02,
        'b2': jax.random.normal(k4, (hidden,), jnp.float32) * 0.02,
        'ln_g': jnp.ones((hidden,), jnp.float32),
        'ln_b': jnp.zeros((hidden,), jnp.float32),
    }


# ----------------------------- main -----------------------------
if __name__ == "__main__":
    root = jax.random.PRNGKey(0)
    kp, kx, kx2 = jax.random.split(root, 3)

    params = init_ffn_params(kp)

    # Small shape consistent with the decoder config: batch=2, seq=8, hidden=32.
    B, T, H = 2, 8, HIDDEN
    x = jax.random.normal(kx, (B, T, H), jnp.float32)

    out = poswise_ffn(params, x)
    jax.block_until_ready(out)
    assert out.shape == (B, T, H)

    # Tolerance relaxed vs pure-f32 reference because matmul operands are bf16
    # (accumulation is still f32); observed error is well under this bound.
    ref = poswise_ffn_ref(params, x)
    assert jnp.allclose(out, ref, atol=2e-2, rtol=2e-2), "mismatch vs reference (small)"

    # Exercise the multi-grid-step / larger-tile path as well (M = 1024 rows).
    B2, T2 = 4, 256
    x2 = jax.random.normal(kx2, (B2, T2, H), jnp.float32)
    out2 = poswise_ffn(params, x2)
    jax.block_until_ready(out2)
    ref2 = poswise_ffn_ref(params, x2)
    assert out2.shape == (B2, T2, H)
    assert jnp.allclose(out2, ref2, atol=2e-2, rtol=2e-2), "mismatch vs reference (tiled)"

    print("KERNEL_OK")
</pallas_src>

<mosaic_0001>
module attributes {stable_mosaic.version = 11 : i64} {
  func.func @_ffn_kernel(%arg0: i32, %arg1: memref<8x32xf32, #tpu.memory_space<vmem>>, %arg2: memref<32x1024xbf16, #tpu.memory_space<vmem>>, %arg3: memref<1x1024xf32, #tpu.memory_space<vmem>>, %arg4: memref<1024x32xbf16, #tpu.memory_space<vmem>>, %arg5: memref<1x32xf32, #tpu.memory_space<vmem>>, %arg6: memref<1x32xf32, #tpu.memory_space<vmem>>, %arg7: memref<1x32xf32, #tpu.memory_space<vmem>>, %arg8: memref<8x32xf32, #tpu.memory_space<vmem>>) attributes {dimension_semantics = [#tpu.dimension_semantics<parallel>], iteration_bounds = array<i64: 2>, scalar_prefetch = 0 : i64, scratch_operands = 0 : i64, tpu.core_type = #tpu.core_type<tc>, window_params = [{transform_indices = @transform_0, window_bounds = array<i64: 8, 32>}, {pipeline_mode = #tpu.pipeline_mode<synchronous>, transform_indices = @transform_1, window_bounds = array<i64: 32, 1024>}, {pipeline_mode = #tpu.pipeline_mode<synchronous>, transform_indices = @transform_2, window_bounds = array<i64: 1, 1024>}, {pipeline_mode = #tpu.pipeline_mode<synchronous>, transform_indices = @transform_3, window_bounds = array<i64: 1024, 32>}, {pipeline_mode = #tpu.pipeline_mode<synchronous>, transform_indices = @transform_4, window_bounds = array<i64: 1, 32>}, {pipeline_mode = #tpu.pipeline_mode<synchronous>, transform_indices = @transform_5, window_bounds = array<i64: 1, 32>}, {pipeline_mode = #tpu.pipeline_mode<synchronous>, transform_indices = @transform_6, window_bounds = array<i64: 1, 32>}, {transform_indices = @transform_7, window_bounds = array<i64: 8, 32>}]} {
    %c0 = arith.constant 0 : index
    %c0_0 = arith.constant 0 : index
    %0 = vector.load %arg1[%c0, %c0_0] : memref<8x32xf32, #tpu.memory_space<vmem>>, vector<8x32xf32>
    %1 = arith.truncf %0 : vector<8x32xf32> to vector<8x32xbf16>
    %c0_1 = arith.constant 0 : index
    %c0_2 = arith.constant 0 : index
    %2 = vector.load %arg2[%c0_1, %c0_2] : memref<32x1024xbf16, #tpu.memory_space<vmem>>, vector<32x1024xbf16>
    %cst = arith.constant dense<0.000000e+00> : vector<8x1024xf32>
    %3 = tpu.matmul %1, %2, %cst {dimension_numbers = #tpu.dot_dimension_numbers<[1], [0], [0], [1], [0, 0, 1, 1], [], []>} : vector<8x32xbf16>, vector<32x1024xbf16>, vector<8x1024xf32> -> vector<8x1024xf32>
    %c0_3 = arith.constant 0 : index
    %c0_4 = arith.constant 0 : index
    %4 = vector.load %arg3[%c0_3, %c0_4] : memref<1x1024xf32, #tpu.memory_space<vmem>>, vector<1x1024xf32>
    %5 = vector.broadcast %4 : vector<1x1024xf32> to vector<8x1024xf32>
    %6 = arith.addf %3, %5 : vector<8x1024xf32>
    %cst_5 = arith.constant 0.000000e+00 : f32
    %7 = vector.broadcast %cst_5 : f32 to vector<8x1024xf32>
    %8 = arith.maximumf %6, %7 : vector<8x1024xf32>
    %9 = arith.truncf %8 : vector<8x1024xf32> to vector<8x1024xbf16>
    %c0_6 = arith.constant 0 : index
    %c0_7 = arith.constant 0 : index
    %10 = vector.load %arg4[%c0_6, %c0_7] : memref<1024x32xbf16, #tpu.memory_space<vmem>>, vector<1024x32xbf16>
    %cst_8 = arith.constant dense<0.000000e+00> : vector<8x32xf32>
    %11 = tpu.matmul %9, %10, %cst_8 {dimension_numbers = #tpu.dot_dimension_numbers<[1], [0], [0], [1], [0, 0, 1, 1], [], []>} : vector<8x1024xbf16>, vector<1024x32xbf16>, vector<8x32xf32> -> vector<8x32xf32>
    %c0_9 = arith.constant 0 : index
    %c0_10 = arith.constant 0 : index
    %12 = vector.load %arg5[%c0_9, %c0_10] : memref<1x32xf32, #tpu.memory_space<vmem>>, vector<1x32xf32>
    %13 = vector.broadcast %12 : vector<1x32xf32> to vector<8x32xf32>
    %14 = arith.addf %11, %13 : vector<8x32xf32>
    %15 = arith.addf %14, %0 : vector<8x32xf32>
    %cst_11 = arith.constant dense<0.000000e+00> : vector<8xf32>
    %16 = vector.multi_reduction <add>, %15, %cst_11 [1] : vector<8x32xf32> to vector<8xf32>
    %17 = vector.shape_cast %16 : vector<8xf32> to vector<8x1xf32>
    %cst_12 = arith.constant 3.200000e+01 : f32
    %18 = vector.broadcast %cst_12 : f32 to vector<8x1xf32>
    %19 = arith.divf %17, %18 : vector<8x1xf32>
    %20 = arith.mulf %15, %15 : vector<8x32xf32>
    %cst_13 = arith.constant dense<0.000000e+00> : vector<8xf32>
    %21 = vector.multi_reduction <add>, %20, %cst_13 [1] : vector<8x32xf32> to vector<8xf32>
    %22 = vector.shape_cast %21 : vector<8xf32> to vector<8x1xf32>
    %cst_14 = arith.constant 3.200000e+01 : f32
    %23 = vector.broadcast %cst_14 : f32 to vector<8x1xf32>
    %24 = arith.divf %22, %23 : vector<8x1xf32>
    %25 = arith.mulf %19, %19 : vector<8x1xf32>
    %26 = arith.subf %24, %25 : vector<8x1xf32>
    %cst_15 = arith.constant 0.000000e+00 : f32
    %27 = vector.broadcast %cst_15 : f32 to vector<8x1xf32>
    %28 = arith.maximumf %26, %27 : vector<8x1xf32>
    %29 = vector.broadcast %19 : vector<8x1xf32> to vector<8x32xf32>
    %30 = arith.subf %15, %29 : vector<8x32xf32>
    %cst_16 = arith.constant 9.99999974E-6 : f32
    %31 = vector.broadcast %cst_16 : f32 to vector<8x1xf32>
    %32 = arith.addf %28, %31 : vector<8x1xf32>
    %33 = math.rsqrt %32 : vector<8x1xf32>
    %34 = vector.broadcast %33 : vector<8x1xf32> to vector<8x32xf32>
    %35 = arith.mulf %30, %34 : vector<8x32xf32>
    %c0_17 = arith.constant 0 : index
    %c0_18 = arith.constant 0 : index
    %36 = vector.load %arg6[%c0_17, %c0_18] : memref<1x32xf32, #tpu.memory_space<vmem>>, vector<1x32xf32>
    %37 = vector.broadcast %36 : vector<1x32xf32> to vector<8x32xf32>
    %38 = arith.mulf %35, %37 : vector<8x32xf32>
    %c0_19 = arith.constant 0 : index
    %c0_20 = arith.constant 0 : index
    %39 = vector.load %arg7[%c0_19, %c0_20] : memref<1x32xf32, #tpu.memory_space<vmem>>, vector<1x32xf32>
    %40 = vector.broadcast %39 : vector<1x32xf32> to vector<8x32xf32>
    %41 = arith.addf %38, %40 : vector<8x32xf32>
    %c0_21 = arith.constant 0 : index
    %c0_22 = arith.constant 0 : index
    %42 = vector.load %arg8[%c0_21, %c0_22] : memref<8x32xf32, #tpu.memory_space<vmem>>, vector<8x32xf32>
    tpu.vector_store %arg8[%c0_21, %c0_22], %41 {strides = array<i32>} : memref<8x32xf32, #tpu.memory_space<vmem>>, vector<8x32xf32>,
    return
  }
  func.func @transform_0(%arg0: i32) -> (i32, i32) {
    %c0_i32 = arith.constant 0 : i32
    %c0_i32_0 = arith.constant 0 : i32
    return %arg0, %c0_i32 : i32, i32
  }
  func.func @transform_1(%arg0: i32) -> (i32, i32) {
    %c0_i32 = arith.constant 0 : i32
    %c0_i32_0 = arith.constant 0 : i32
    %c0_i32_1 = arith.constant 0 : i32
    return %c0_i32, %c0_i32_0 : i32, i32
  }
  func.func @transform_2(%arg0: i32) -> (i32, i32) {
    %c0_i32 = arith.constant 0 : i32
    %c0_i32_0 = arith.constant 0 : i32
    %c0_i32_1 = arith.constant 0 : i32
    return %c0_i32, %c0_i32_0 : i32, i32
  }
  func.func @transform_3(%arg0: i32) -> (i32, i32) {
    %c0_i32 = arith.constant 0 : i32
    %c0_i32_0 = arith.constant 0 : i32
    %c0_i32_1 = arith.constant 0 : i32
    return %c0_i32, %c0_i32_0 : i32, i32
  }
  func.func @transform_4(%arg0: i32) -> (i32, i32) {
    %c0_i32 = arith.constant 0 : i32
    %c0_i32_0 = arith.constant 0 : i32
    %c0_i32_1 = arith.constant 0 : i32
    return %c0_i32, %c0_i32_0 : i32, i32
  }
  func.func @transform_5(%arg0: i32) -> (i32, i32) {
    %c0_i32 = arith.constant 0 : i32
    %c0_i32_0 = arith.constant 0 : i32
    %c0_i32_1 = arith.constant 0 : i32
    return %c0_i32, %c0_i32_0 : i32, i32
  }
  func.func @transform_6(%arg0: i32) -> (i32, i32) {
    %c0_i32 = arith.constant 0 : i32
    %c0_i32_0 = arith.constant 0 : i32
    %c0_i32_1 = arith.constant 0 : i32
    return %c0_i32, %c0_i32_0 : i32, i32
  }
  func.func @transform_7(%arg0: i32) -> (i32, i32) {
    %c0_i32 = arith.constant 0 : i32
    %c0_i32_0 = arith.constant 0 : i32
    return %arg0, %c0_i32 : i32, i32
  }
}

</mosaic_0001>

<bundles_post_ra>
// kernel: tpu_custom_call.1
= control target key start
LH: loop header
LB: loop body
LE: loop exit
PB: predicated region body
PF: predicated region fallthrough
CT: control target
= control target key end

     0   :  { %12 = vsyncpa [#allocation3], 0  ;;  %s2172_s0 = inlined_call_operand.vmem [shape: f32[16,32], index: 0, kind: input, shape index: {}]   ;;  %s2173_s1 = inlined_call_operand.vmem [shape: bf16[32,1024], index: 1, kind: input, shape index: {}]   ;;  %s2174_s2 = inlined_call_operand.vmem [shape: f32[1,1024], index: 2, kind: input, shape index: {}]   ;;  %s2175_s3 = inlined_call_operand.vmem [shape: bf16[1024,32], index: 3, kind: input, shape index: {}]   ;;  %s2176_s4 = inlined_call_operand.vmem [shape: f32[1,32], index: 4, kind: input, shape index: {}]   ;;  %s2177_s5 = inlined_call_operand.vmem [shape: f32[1,32], index: 5, kind: input, shape index: {}]   ;;  %s2178_s6 = inlined_call_operand.vmem [shape: f32[1,32], index: 6, kind: input, shape index: {}]   ;;  %s2179_s7 = inlined_call_operand.hbm [shape: f32[16,32], index: 7, kind: output, shape index: {}]  }
   0x1   :  { %14 = vsyncpa [#allocation3 + $0x1], 0  ;;  %s1783_s24 = smov 0   ;;  %s1785_s25 = smov 0  }
   0x2   :  { %s1787_s26 = smov 0   ;;  %s1789_s27 = smov 0  }
   0x3 LB: > { %s1804_s28 = sadd.s32 4294967295, %s1739_s27   ;;  %s1386_s29 = sadd.s32 4294967294, %s1739_s27   ;;  %s1739_s27 = sphi %s1789_s27, %s2185_s27   ;;  %s1735_s26 = sphi %s1787_s26, %s2184_s26   ;;  %s1731_s25 = sphi %s1785_s25, %s2183_s25   ;;  %s1727_s24 = sphi %s1783_s24, %s2182_s24  }
   0x4   : > { %s1808_s30 = sadd.s32 1, %s1739_s27   ;;  %s179_s8 = sadd.s32 1, %s1735_s26 }
   0x5   : > { %s176_s9 = ssub.s32 %s1739_s27, %s1808_s30  ;;  %p189_p0 = scmp.ne.s32.totalorder %s1735_s26, %s1731_s25 }
   0x6   : > { %p177_p1 = scmp.eq.s32.totalorder %s176_s9, 0  ;;  %p190_p2 = scmp.eq.s32.totalorder %s1804_s28, 1 }
   0x7   : > { %p195_p3 = scmp.ne.s32.totalorder %s1731_s25, %s1727_s24  ;;  %p196_p4 = scmp.eq.s32.totalorder %s1386_s29, 1 }
   0x8   : > { %s1819_s10 = scalar_select %p177_p1, %s1735_s26, %s179_s8  }
   0x9   : > { %p1821_p5 = por %p190_p2, %p189_p0  ;;  %p1825_p6 = por %p196_p4, %p195_p3 }
   0xa   : > { %p1389_p7 = scmp.ge.s32.totalorder %s1739_s27, 1  ;;  %p239_p8 = scmp.lt.s32.totalorder %s1739_s27, 3 }
   0xc   : > { %p240_p9 = pnand %p1389_p7, %p239_p8 }
   0xd   : > { %v277_v0 = vld [vmem:[%s2173_s1] sm:$0xff] (!%p240_p9)  ;;  %v278_v2 = vld [vmem:[%s2173_s1 + $0x8] sm:$0xff] (!%p240_p9)  ;;  %p270_p10 = scmp.lt.s32.totalorder (!%p240_p9), %s1804_s28, 1  ;;  %v1741_v8 = vmov (!%p240_p9), 0   ;;  %v279_v14 = vld [vmem:[%s2173_s1 + $0x10] sm:$0xff] (!%p240_p9)  ;;  %vm415_vm0 = vcmask (!%p240_p9), 261120  }
   0xe   : > { %243 = sbr.rel (%p240_p9) target bundleno = 687 (0x2af), region = 48  ;;  %v281_v1 = vld [vmem:[%s2173_s1 + $0x20] sm:$0xff] (!%p240_p9)  ;;  %v282_v4 = vld [vmem:[%s2173_s1 + $0x28] sm:$0xff] (!%p240_p9)  ;;  %451 = vmatprep.mubr.bf16.mxu0 (!%p240_p9), %v1741_v8  ;;  %492 = vmatprep.mubr.bf16.mxu1 (!%p240_p9), %v1741_v8  ;;  %v283_v16 = vld [vmem:[%s2173_s1 + $0x30] sm:$0xff] (!%p240_p9)  ;;  %s267_s14 = sand.u32 (!%p240_p9), 1, %s1731_s25  }
   0xf   : > { %v1393_v3 = vcombine.high (!%p240_p9), %v277_v0, %v281_v1  ;;  %v1392_v5 = vcombine.low (!%p240_p9), %v277_v0, %v281_v1  ;;  %v285_v6 = vld [vmem:[%s2173_s1 + $0x40] sm:$0xff] (!%p240_p9)  ;;  %v1395_v9 = vcombine.high (!%p240_p9), %v278_v2, %v282_v4  ;;  %v1394_v10 = vcombine.low (!%p240_p9), %v278_v2, %v282_v4  ;;  %v286_v12 = vld [vmem:[%s2173_s1 + $0x48] sm:$0xff] (!%p240_p9)  ;;  %v280_v17 = vld [vmem:[%s2173_s1 + $0x18] sm:$0xff] (!%p240_p9)  ;;  %s1480_s20 = sshll.u32 (!%p240_p9), %s1804_s28, 7  ;;  %s1314_s9 = scalar_lea.sflag (!%p240_p9), [#allocation3], %s267_s14 }
  0x10   : > { %v289_v7 = vld [vmem:[%s2173_s1 + $0x60] sm:$0xff] (!%p240_p9)  ;;  %v290_v13 = vld [vmem:[%s2173_s1 + $0x68] sm:$0xff] (!%p240_p9)  ;;  %v284_v18 = vld [vmem:[%s2173_s1 + $0x38] sm:$0xff] (!%p240_p9)  ;;  %v1397_v22 = vcombine.high (!%p240_p9), %v279_v14, %v283_v16  ;;  %v1396_v29 = vcombine.low (!%p240_p9), %v279_v14, %v283_v16  ;;  %s2129_s8 = scalar_lea.hbm (!%p240_p9), %s2179_s7, %s1480_s20 }
  0x11   : > { %v1401_v11 = vcombine.high (!%p240_p9), %v285_v6, %v289_v7  ;;  %419 = vmatprep.subr.bf16.mxu0 (!%p240_p9), %v1393_v3  ;;  %v1403_v15 = vcombine.high (!%p240_p9), %v286_v12, %v290_v13  ;;  %460 = vmatprep.subr.bf16.mxu1 (!%p240_p9), %v1395_v9  ;;  %v1400_v19 = vcombine.low (!%p240_p9), %v285_v6, %v289_v7  ;;  %v287_v20 = vld [vmem:[%s2173_s1 + $0x50] sm:$0xff] (!%p240_p9)  ;;  %v288_v26 = vld [vmem:[%s2173_s1 + $0x58] sm:$0xff] (!%p240_p9)  ;;  %v1611_v35 = vld [vmem:[%s2175_s3 + $0x40] sm:$0xff] (!%p240_p9)  }
  0x12   : > { %420 = vmatpush1.bf16.msra.mxu0 (!%p240_p9), %v1392_v5  ;;  %461 = vmatpush1.bf16.msra.mxu1 (!%p240_p9), %v1394_v10  ;;  %v1402_v21 = vcombine.low (!%p240_p9), %v286_v12, %v290_v13  ;;  %v291_v23 = vld [vmem:[%s2173_s1 + $0x70] sm:$0xff] (!%p240_p9)  ;;  %v1399_v25 = vcombine.high (!%p240_p9), %v280_v17, %v284_v18  ;;  %v292_v28 = vld [vmem:[%s2173_s1 + $0x78] sm:$0xff] (!%p240_p9)  ;;  %v1398_v30 = vcombine.low (!%p240_p9), %v280_v17, %v284_v18  ;;  %v1612_v36 = vld [vmem:[%s2175_s3 + $0xc0] sm:$0xff] (!%p240_p9)   ;;  %v295_v5 = vlaneseq (!%p240_p9) }
  0x13   : > { %421 = vmatprep.subr.bf16.mxu0 (!%p240_p9), %v1401_v11  ;;  %462 = vmatprep.subr.bf16.mxu1 (!%p240_p9), %v1403_v15  ;;  %v1405_v31 = vcombine.high (!%p240_p9), %v287_v20, %v291_v23  ;;  %v1407_v32 = vcombine.high (!%p240_p9), %v288_v26, %v292_v28  ;;  %v1404_v33 = vcombine.low (!%p240_p9), %v287_v20, %v291_v23  ;;  %v1613_v37 = vld [vmem:[%s2175_s3] sm:$0xff] (!%p240_p9)   ;;  %v1615_v39 = vld [vmem:[%s2175_s3 + $0x48] sm:$0xff] (!%p240_p9)   ;;  %v1619_v43 = vld [vmem:[%s2175_s3 + $0x50] sm:$0xff] (!%p240_p9)  }
  0x14   : > { %v1406_v34 = vcombine.low (!%p240_p9), %v288_v26, %v292_v28  ;;  %v1614_v38 = vld [vmem:[%s2175_s3 + $0x80] sm:$0xff] (!%p240_p9)   ;;  %v1616_v40 = vld [vmem:[%s2175_s3 + $0xc8] sm:$0xff] (!%p240_p9)   ;;  %v1620_v44 = vld [vmem:[%s2175_s3 + $0xd0] sm:$0xff] (!%p240_p9)   ;;  %v1996_v6 = vshrl.u32 (!%p240_p9), %v295_v5, 7 }
  0x15   : > { %s271_s15 = scalar_select %p270_p10, %s1804_s28, 1  ;;  %v1617_v41 = vld [vmem:[%s2175_s3 + $0x8] sm:$0xff]   ;;  %v1621_v45 = vld [vmem:[%s2175_s3 + $0x10] sm:$0xff]   ;;  %v1623_v47 = vld [vmem:[%s2175_s3 + $0x58] sm:$0xff]  }
  0x16   : > { %422 = vmatpush1.bf16.msra.mxu0 %v1400_v19  ;;  %463 = vmatpush1.bf16.msra.mxu1 %v1402_v21  ;;  %v1618_v42 = vld [vmem:[%s2175_s3 + $0x88] sm:$0xff]   ;;  %v1622_v46 = vld [vmem:[%s2175_s3 + $0x90] sm:$0xff]   ;;  %v1624_v48 = vld [vmem:[%s2175_s3 + $0xd8] sm:$0xff]   ;;  %v297_v7 = vsub.s32 0, %v1996_v6  ;;  %v305_v9 = vsub.s32 2, %v1996_v6  ;;  %v301_v10 = vsub.s32 1, %v1996_v6 }
  0x17   : > { %s1391_s29 = sshll.u32 %s271_s15, 3  ;;  %501 = vmatprep.subr.bf16.mxu0 %v1397_v22  ;;  %542 = vmatprep.subr.bf16.mxu1 %v1399_v25  ;;  %v1625_v49 = vld [vmem:[%s2175_s3 + $0x18] sm:$0xff]   ;;  %v1627_v51 = vld [vmem:[%s2175_s3 + $0x60] sm:$0xff]   ;;  %v1631_v55 = vld [vmem:[%s2175_s3 + $0x68] sm:$0xff]   ;;  %v309_v11 = vsub.s32 3, %v1996_v6  ;;  %v317_v25 = vsub.s32 5, %v1996_v6 }
  0x18   : > { %s273_s16 = scalar_lea.vmem %s2172_s0, %s1391_s29  ;;  %v1626_v50 = vld [vmem:[%s2175_s3 + $0x98] sm:$0xff]   ;;  %v1628_v52 = vld [vmem:[%s2175_s3 + $0xe0] sm:$0xff]   ;;  %v1632_v56 = vld [vmem:[%s2175_s3 + $0xe8] sm:$0xff]   ;;  %s1742_s28 = smov [#allocation2]  }
  0x19   : > { %v1880_v24 = vld [vmem:[%s273_s16] sm:$0xff]  ;;  %v1633_v57 = vld [vmem:[%s2175_s3 + $0x28] sm:$0xff]   ;;  %v1635_v59 = vld [vmem:[%s2175_s3 + $0x70] sm:$0xff]   ;;  %s1390_s16 = sshll.u32 %s267_s14, 3 }
  0x1a   : > { %v276_v27 = vpack.c.bf16 %v1880_v24, %v1880_v24  ;;  %v1629_v53 = vld [vmem:[%s2175_s3 + $0x20] sm:$0xff]   ;;  %v1634_v58 = vld [vmem:[%s2175_s3 + $0xa8] sm:$0xff]   ;;  %v1636_v60 = vld [vmem:[%s2175_s3 + $0xf0] sm:$0xff]   ;;  %s269_s21 = scalar_lea.vmem [#allocation2], %s1390_s16  ;;  %s1681_s16 = sshll.u32 %s1742_s28, 4  ;;  %s1682_s16 = int_to_ptr.vmem [resolvable:$false] %s1681_s16 }
  0x1b   : > { %v1630_v54 = vld [vmem:[%s2175_s3 + $0xa0] sm:$0xff]   ;;  %v1637_v61 = vld [vmem:[%s2175_s3 + $0x30] sm:$0xff]   ;;  %v1639_v63 = vld [vmem:[%s2175_s3 + $0x78] sm:$0xff]   ;;  %s1327_s22 = sshll.u32 %s269_s21, 4  ;;  %s1683_s17 = scalar_lea.vmem %s1682_s16, 256  ;;  %s2131_s22 = int_to_ptr.vmem [resolvable:$true] %s1327_s22 }
  0x1c   : > { %1408 = vmatmul.mubr.msk.bf16.vlgmr.msra.gmra.mrb[0].mxu0 %vm415_vm0, %v276_v27  ;;  %1409 = vmatmul.mubr.msk.bf16.vlgmr.msra.gmra.mrb[0].mxu1 %vm415_vm0, %v276_v27  ;;  %v1638_v62 = vld [vmem:[%s2175_s3 + $0xb0] sm:$0xff]   ;;  %v1640_v0 = vld [vmem:[%s2175_s3 + $0xf8] sm:$0xff]   ;;  %v1643_v3 = vld [vmem:[%s2175_s3 + $0x140] sm:$0xff]   ;;  %s1677_s13 = scalar_lea.vmem %s2131_s22, 128  ;;  %p1684_p0 = scmp.lt.s32.totalorder %s2131_s22, %s1682_s16 }
  0x1d   : > { %502 = vmatpush1.bf16.msra.mxu0 %v1396_v29  ;;  %543 = vmatpush1.bf16.msra.mxu1 %v1398_v30  ;;  %v1641_v1 = vld [vmem:[%s2175_s3 + $0x38] sm:$0xff]   ;;  %v1644_v4 = vld [vmem:[%s2175_s3 + $0x1c0] sm:$0xff]   ;;  %v325_v30 = vsub.s32 7, %v1996_v6  ;;  %p1678_p11 = scmp.ne.s32.totalorder %s2131_s22, %s1677_s13  ;;  %p1685_p1 = scmp.lt.s32.totalorder %s1683_s17, %s1677_s13 }
  0x1e   : > { %503 = vmatprep.subr.bf16.mxu0 %v1405_v31  ;;  %544 = vmatprep.subr.bf16.mxu1 %v1407_v32  ;;  %v1642_v2 = vld [vmem:[%s2175_s3 + $0xb8] sm:$0xff]   ;;  %v1659_v5 = vld [vmem:[%s2175_s3 + $0x160] sm:$0xff]  }
  0x1f   : > { %533 = vmatprep.mubr.bf16.mxu0 %v1741_v8  ;;  %574 = vmatprep.mubr.bf16.mxu1 %v1741_v8  ;;  %v2002_v8 = vld [vmem:[%s2174_s2] sm:$0xff]  ;;  %p1679_p12 = pnand %p1678_p11, %p1821_p5  ;;  %p1686_p2 = por %p1685_p1, %p1684_p0 }
  0x20   : > { %v298_v12 = vrot.slane %v2002_v8, %v297_v7  ;;  %v306_v13 = vrot.slane %v2002_v8, %v305_v9  ;;  %v302_v14 = vrot.slane %v2002_v8, %v301_v10  ;;  %v310_v15 = vrot.slane %v2002_v8, %v309_v11  ;;  %v1660_v7 = vld [vmem:[%s2175_s3 + $0x1e0] sm:$0xff]  }
  0x21   : > { %504 = vmatpush1.bf16.msra.mxu0 %v1404_v33  ;;  %545 = vmatpush1.bf16.msra.mxu1 %v1406_v34  ;;  %v1661_v9 = vld [vmem:[%s2175_s3 + $0x120] sm:$0xff]   ;;  %v321_v10 = vsub.s32 6, %v1996_v6  ;;  %p1680_p13 = pneg %p1679_p12 }
  0x22   : > { %1483 = vmatprep.subr.bf16.mxu0 %v1611_v35  ;;  %1505 = vmatprep.subr.bf16.mxu1 %v1612_v36  ;;  %v1662_v11 = vld [vmem:[%s2175_s3 + $0x1a0] sm:$0xff]  }
  0x23   : > { %p1687_p3 = pnand %p1686_p2, %p1680_p13 }
  0x24   : > { %1410 = vmatmul.mubr.msk.bf16.vlgmr.msra.gmra.mrb[4].mxu0 %vm415_vm0, %v276_v27  ;;  %1411 = vmatmul.mubr.msk.bf16.vlgmr.msra.gmra.mrb[4].mxu1 %vm415_vm0, %v276_v27 }
  0x25   : > { %1484 = vmatpush3.bf16.msra.mxu0 %v1613_v37  ;;  %1506 = vmatpush3.bf16.msra.mxu1 %v1614_v38  ;;  %v1645_v37 = vld [vmem:[%s2175_s3 + $0x100] sm:$0xff]   ;;  %v318_v38 = vrot.slane %v2002_v8, %v317_v25  ;;  %v1672_v25 = vld [vmem:[%s2175_s3 + $0x1f8] sm:$0xff]  }
  0x26   : > { %1485 = vmatprep.subr.bf16.mxu0 %v1615_v39  ;;  %1507 = vmatprep.subr.bf16.mxu1 %v1616_v40 }
  0x29   : > { %1486 = vmatpush3.bf16.msra.mxu0 %v1617_v41  ;;  %1508 = vmatpush3.bf16.msra.mxu1 %v1618_v42  ;;  %v1646_v41 = vld [vmem:[%s2175_s3 + $0x180] sm:$0xff]   ;;  %v1647_v42 = vld [vmem:[%s2175_s3 + $0x148] sm:$0xff]  }
  0x2a   : > { %1487 = vmatprep.subr.bf16.mxu0 %v1619_v43  ;;  %1509 = vmatprep.subr.bf16.mxu1 %v1620_v44  ;;  %v326_v43 = vrot.slane %v2002_v8, %v325_v30  ;;  %v1648_v44 = vld [vmem:[%s2175_s3 + $0x1c8] sm:$0xff]  }
  0x2d   : > { %1488 = vmatpush3.bf16.msra.mxu0 %v1621_v45  ;;  %1510 = vmatpush3.bf16.msra.mxu1 %v1622_v46 }
  0x2e   : > { %1489 = vmatprep.subr.bf16.mxu0 %v1623_v47  ;;  %1511 = vmatprep.subr.bf16.mxu1 %v1624_v48  ;;  %v1649_v48 = vld [vmem:[%s2175_s3 + $0x108] sm:$0xff]  }
  0x31   : > { %1490 = vmatpush3.bf16.msra.mxu0 %v1625_v49  ;;  %1512 = vmatpush3.bf16.msra.mxu1 %v1626_v50 }
  0x32   : > { %1491 = vmatprep.subr.bf16.mxu0 %v1627_v51  ;;  %1513 = vmatprep.subr.bf16.mxu1 %v1628_v52  ;;  %v1650_v52 = vld [vmem:[%s2175_s3 + $0x188] sm:$0xff]  }
  0x35   : > { %1492 = vmatpush3.bf16.msra.mxu0 %v1629_v53  ;;  %1514 = vmatpush3.bf16.msra.mxu1 %v1630_v54  ;;  %v1651_v53 = vld [vmem:[%s2175_s3 + $0x150] sm:$0xff]  }
  0x36   : > { %1493 = vmatprep.subr.bf16.mxu0 %v1631_v55  ;;  %1515 = vmatprep.subr.bf16.mxu1 %v1632_v56 }
  0x39   : > { %1494 = vmatpush3.bf16.msra.mxu0 %v1633_v57  ;;  %1516 = vmatpush3.bf16.msra.mxu1 %v1634_v58  ;;  %v1652_v57 = vld [vmem:[%s2175_s3 + $0x1d0] sm:$0xff]  }
  0x3a   : > { %1495 = vmatprep.subr.bf16.mxu0 %v1635_v59  ;;  %1517 = vmatprep.subr.bf16.mxu1 %v1636_v60 }
  0x3d   : > { %1496 = vmatpush3.bf16.msra.mxu0 %v1637_v61  ;;  %1518 = vmatpush3.bf16.msra.mxu1 %v1638_v62  ;;  %v1653_v61 = vld [vmem:[%s2175_s3 + $0x110] sm:$0xff]  }
  0x3e   : > { %1497 = vmatprep.subr.bf16.mxu0 %v1639_v63  ;;  %1519 = vmatprep.subr.bf16.mxu1 %v1640_v0  ;;  %v1654_v63 = vld [vmem:[%s2175_s3 + $0x190] sm:$0xff]   ;;  %v1655_v0 = vld [vmem:[%s2175_s3 + $0x158] sm:$0xff]  }
  0x41   : > { %1498 = vmatpush3.bf16.msra.mxu0 %v1641_v1  ;;  %1520 = vmatpush3.bf16.msra.mxu1 %v1642_v2  ;;  %v1656_v2 = vld [vmem:[%s2175_s3 + $0x1d8] sm:$0xff]  }
  0x42   : > { %1527 = vmatprep.subr.bf16.mxu0 %v1643_v3  ;;  %1549 = vmatprep.subr.bf16.mxu1 %v1644_v4  ;;  %v1657_v3 = vld [vmem:[%s2175_s3 + $0x118] sm:$0xff]  }
  0x43   : > { %v1658_v4 = vld [vmem:[%s2175_s3 + $0x198] sm:$0xff]  }
  0xef   : > { %v453_v16 = vpop.f32.mrb[0].mxu0  ;;  %v494_v18 = vpop.f32.mrb[0].mxu1 }
  0xf0   : > { %v454_v17 = vadd.f32 %v453_v16, %v298_v12  ;;  %v455_v19 = vpop.f32.mrb[1].mxu0  ;;  %v495_v20 = vadd.f32 %v494_v18, %v306_v13  ;;  %v496_v22 = vpop.f32.mrb[1].mxu1  ;;  %v313_v12 = vsub.s32 4, %v1996_v6  ;;  %v1663_v13 = vld [vmem:[%s2175_s3 + $0x168] sm:$0xff]   ;;  %v322_v16 = vrot.slane %v2002_v8, %v321_v10  ;;  %v1667_v18 = vld [vmem:[%s2175_s3 + $0x170] sm:$0xff]  }
  0xf1   : > { %v456_v21 = vadd.f32 %v455_v19, %v302_v14  ;;  %v457_v23 = vpop.f32.mrb[2].mxu0  ;;  %v497_v27 = vadd.f32 %v496_v22, %v310_v15  ;;  %v498_v28 = vpop.f32.mrb[2].mxu1  ;;  %v1664_v14 = vld [vmem:[%s2175_s3 + $0x1e8] sm:$0xff]   ;;  %v1668_v19 = vld [vmem:[%s2175_s3 + $0x1f0] sm:$0xff]   ;;  %v1478_v10 = vld [vmem:[%s2178_s6] ss:$0 sm:$0xff] }
  0xf2   : > { %v583_v26 = vmax.f32 %v454_v17, 0.0  ;;  %v458_v29 = vpop.f32.mrb[3].mxu0  ;;  %v585_v31 = vmax.f32 %v495_v20, 0.0  ;;  %v499_v33 = vpop.f32.mrb[3].mxu1  ;;  %v1665_v15 = vld [vmem:[%s2175_s3 + $0x128] sm:$0xff]   ;;  %v314_v17 = vrot.slane %v2002_v8, %v313_v12  ;;  %v1669_v8 = vld [vmem:[%s2175_s3 + $0x130] sm:$0xff]  }
  0xf3   : > { %v584_v32 = vmax.f32 %v456_v21, 0.0  ;;  %v586_v34 = vmax.f32 %v497_v27, 0.0  ;;  %v1666_v6 = vld [vmem:[%s2175_s3 + $0x1a8] sm:$0xff]   ;;  %v1670_v22 = vld [vmem:[%s2175_s3 + $0x1b0] sm:$0xff]   ;;  %v1671_v23 = vld [vmem:[%s2175_s3 + $0x178] sm:$0xff]  }
  0xf4   : > { %v593_v35 = vpack.c.bf16 %v585_v31, %v585_v31  ;;  %v591_v39 = vpack.c.bf16 %v583_v26, %v583_v26  ;;  %v1673_v27 = vld [vmem:[%s2175_s3 + $0x138] sm:$0xff]  }
  0xf5   : > { %v592_v36 = vpack.c.bf16 %v584_v32, %v584_v32  ;;  %v594_v40 = vpack.c.bf16 %v586_v34, %v586_v34  ;;  %v1674_v29 = vld [vmem:[%s2175_s3 + $0x1b8] sm:$0xff]   ;;  %v1412_v34 = vld [vmem:[%s2176_s4] ss:$0 sm:$0xff] }
  0xf7   : > { %1150 = vmatprep.mubr.bf16.mxu0 %v592_v36  ;;  %v2027_v45 = vpop.f32.mrb[4].mxu0  ;;  %1190 = vmatprep.mubr.bf16.mxu1 %v594_v40  ;;  %v576_v47 = vpop.f32.mrb[4].mxu1 }
  0xf8   : > { %1151 = vmatmul.mubr.bf16.vlgmr.msra.gmra.mrb[8].mxu0 %v591_v39  ;;  %v537_v46 = vpop.f32.mrb[5].mxu0  ;;  %1191 = vmatmul.mubr.bf16.vlgmr.msra.gmra.mrb[8].mxu1 %v593_v35  ;;  %v578_v51 = vpop.f32.mrb[5].mxu1  ;;  %v577_v20 = vadd.f32 %v576_v47, %v322_v16  ;;  %v536_v21 = vadd.f32 %v2027_v45, %v314_v17 }
  0xf9   : > { %1528 = vmatpush3.bf16.msra.mxu0 %v1645_v37  ;;  %v538_v49 = vadd.f32 %v537_v46, %v318_v38  ;;  %v539_v50 = vpop.f32.mrb[6].mxu0  ;;  %1550 = vmatpush3.bf16.msra.mxu1 %v1646_v41  ;;  %v579_v55 = vadd.f32 %v578_v51, %v326_v43  ;;  %v580_v56 = vpop.f32.mrb[6].mxu1 }
  0xfa   : > { %1529 = vmatprep.subr.bf16.mxu0 %v1647_v42  ;;  %v540_v54 = vpop.f32.mrb[7].mxu0  ;;  %1551 = vmatprep.subr.bf16.mxu1 %v1648_v44  ;;  %v581_v59 = vpop.f32.mrb[7].mxu1  ;;  %v589_v26 = vmax.f32 %v577_v20, 0.0  ;;  %v587_v28 = vmax.f32 %v536_v21, 0.0 }
  0xfb   : > { %v588_v58 = vmax.f32 %v538_v49, 0.0  ;;  %v590_v60 = vmax.f32 %v579_v55, 0.0 }
  0xfc   : > { %v597_v30 = vpack.c.bf16 %v589_v26, %v589_v26  ;;  %v595_v31 = vpack.c.bf16 %v587_v28, %v587_v28 }
  0xfd   : > { %1530 = vmatpush3.bf16.msra.mxu0 %v1649_v48  ;;  %v596_v62 = vpack.c.bf16 %v588_v58, %v588_v58  ;;  %1552 = vmatpush3.bf16.msra.mxu1 %v1650_v52  ;;  %v598_v1 = vpack.c.bf16 %v590_v60, %v590_v60 }
  0xfe   : > { %1531 = vmatprep.subr.bf16.mxu0 %v1651_v53  ;;  %1553 = vmatprep.subr.bf16.mxu1 %v1652_v57 }
  0xff   : > { %1230 = vmatprep.mubr.bf16.mxu0 %v596_v62  ;;  %1270 = vmatprep.mubr.bf16.mxu1 %v598_v1 }
 0x101   : > { %1532 = vmatpush3.bf16.msra.mxu0 %v1653_v61  ;;  %1554 = vmatpush3.bf16.msra.mxu1 %v1654_v63 }
 0x102   : > { %1533 = vmatprep.subr.bf16.mxu0 %v1655_v0  ;;  %1555 = vmatprep.subr.bf16.mxu1 %v1656_v2 }
 0x105   : > { %1534 = vmatpush3.bf16.msra.mxu0 %v1657_v3  ;;  %1556 = vmatpush3.bf16.msra.mxu1 %v1658_v4 }
 0x106   : > { %1535 = vmatprep.subr.bf16.mxu0 %v1659_v5  ;;  %1557 = vmatprep.subr.bf16.mxu1 %v1660_v7  ;;  %v1477_v7 = vld [vmem:[%s2177_s5] ss:$0 sm:$0xff] }
 0x109   : > { %1536 = vmatpush3.bf16.msra.mxu0 %v1661_v9  ;;  %1558 = vmatpush3.bf16.msra.mxu1 %v1662_v11 }
 0x10a   : > { %1537 = vmatprep.subr.bf16.mxu0 %v1663_v13  ;;  %1559 = vmatprep.subr.bf16.mxu1 %v1664_v14 }
 0x10d   : > { %1538 = vmatpush3.bf16.msra.mxu0 %v1665_v15  ;;  %1560 = vmatpush3.bf16.msra.mxu1 %v1666_v6 }
 0x10e   : > { %1539 = vmatprep.subr.bf16.mxu0 %v1667_v18  ;;  %1561 = vmatprep.subr.bf16.mxu1 %v1668_v19 }
 0x111   : > { %1540 = vmatpush3.bf16.msra.mxu0 %v1669_v8  ;;  %1562 = vmatpush3.bf16.msra.mxu1 %v1670_v22 }
 0x112   : > { %1541 = vmatprep.subr.bf16.mxu0 %v1671_v23  ;;  %1563 = vmatprep.subr.bf16.mxu1 %v1672_v25 }
 0x115   : > { %1542 = vmatpush3.bf16.msra.mxu0 %v1673_v27  ;;  %1564 = vmatpush3.bf16.msra.mxu1 %v1674_v29 }
 0x118   : > { %1231 = vmatmul.mubr.bf16.vlgmr.msra.gmra.mrb[12].mxu0 %v595_v31  ;;  %1271 = vmatmul.mubr.bf16.vlgmr.msra.gmra.mrb[12].mxu1 %v597_v30 }
 0x1cb   : > { %v1499_v32 = vpop.f32.mrb[8].mxu0  ;;  %v1521_v33 = vpop.f32.mrb[8].mxu1 }
 0x1cc   : > { %v1500_v35 = vpop.f32.mrb[9].mxu0  ;;  %v1522_v37 = vpop.f32.mrb[9].mxu1 }
 0x1cd   : > { %v1501_v36 = vadd.f32 %v1500_v35, %v1499_v32  ;;  %v1502_v38 = vpop.f32.mrb[10].mxu0  ;;  %v1523_v39 = vadd.f32 %v1522_v37, %v1521_v33  ;;  %v1524_v40 = vpop.f32.mrb[10].mxu1 }
 0x1ce   : > { %v1503_v41 = vpop.f32.mrb[11].mxu0  ;;  %v1525_v43 = vpop.f32.mrb[11].mxu1 }
 0x1cf   : > { %v1153_v42 = vadd.f32 %v1501_v36, %v1412_v34 }
 0x1d1   : > { %v1193_v44 = vadd.f32 %v1523_v39, %v1153_v42 }
 0x1eb   : > { %v1543_v45 = vpop.f32.mrb[12].mxu0  ;;  %v1565_v46 = vpop.f32.mrb[12].mxu1 }
 0x1ec   : > { %v1544_v47 = vpop.f32.mrb[13].mxu0  ;;  %v1566_v49 = vpop.f32.mrb[13].mxu1 }
 0x1ed   : > { %v1545_v48 = vadd.f32 %v1544_v47, %v1543_v45  ;;  %v1546_v50 = vpop.f32.mrb[14].mxu0  ;;  %v1567_v51 = vadd.f32 %v1566_v49, %v1565_v46  ;;  %v1568_v52 = vpop.f32.mrb[14].mxu1 }
 0x1ee   : > { %v1547_v53 = vpop.f32.mrb[15].mxu0  ;;  %v1569_v55 = vpop.f32.mrb[15].mxu1 }
 0x1ef   : > { %v1233_v54 = vadd.f32 %v1545_v48, %v1193_v44 }
 0x1f1   : > { %v1273_v56 = vadd.f32 %v1567_v51, %v1233_v54 }
 0x1f3   : > { %v1278_v57 = vadd.f32 %v1273_v56, %v1880_v24 }
 0x1f5   : > { %v1279_v58 = vsel %vm415_vm0, %v1278_v57, 0.0  ;;  %v1284_v59 = vmul.f32 %v1278_v57, %v1278_v57 }
 0x1f6   : > { %1280 = vadd.xlane.f32.xlu0 %v1279_v58 }
 0x1f7   : > { %v1285_v60 = vsel %vm415_vm0, %v1284_v59, 0.0 }
 0x1fa   : > { %1286 = vadd.xlane.f32.xlu0 %v1285_v60 }
 0x283   : > { %v1281_v61 = vpop.xlane.xlu0 %1280 }
 0x284   : > { %v1283_v62 = vmul.f32 0.03125, %v1281_v61 }
 0x286   : > { %v1289_v0 = vmul.f32 %v1283_v62, %v1283_v62  ;;  %v1292_v24 = vsub.f32 %v1278_v57, %v1283_v62 }
 0x287   : > { %v1287_v63 = vpop.xlane.xlu0 %1286 }
 0x288   : > { %v1288_v1 = vmul.f32 0.03125, %v1287_v63 }
 0x28a   : > { %v1290_v2 = vsub.f32 %v1288_v1, %v1289_v0 }
 0x28c   : > { %v1291_v3 = vmax.f32 %v1290_v2, 0.0 }
 0x28e   : > { %v1293_v4 = vadd.f32 1e-05, %v1291_v3 }
 0x290   : > { %1675 = vrsqrt.f32 %v1293_v4 }
 0x29a   : > { %v1676_v5 = vpop.eup %1675 }
 0x29b   : > { %v1295_v9 = vmul.f32 %v1676_v5, %v1292_v24 }
 0x29d   : > { %v1303_v11 = vmul.f32 %v1477_v7, %v1295_v9 }
 0x29f   : > { %v1311_v12 = vadd.f32 %v1478_v10, %v1303_v11 }
 0x2a1   : > { %1312 = vst.msk [vmem:[%s269_s21] sm:$0xff] %vm415_vm0, %v1311_v12 }
 0x2a2   : > { %1690 = shalt.err (!%p1687_p3)
}
 0x2a3   : > { %s1691_s14 = scalar_lea.hbm %s2129_s8, 128  ;;  %s1695_s19 = scalar_lea.hbm %s2179_s7, 256 }
 0x2a4   : > { %p1692_p4 = scmp.ne.s32.totalorder %s2129_s8, %s1691_s14  ;;  %p1696_p9 = scmp.lt.u32.totalorder %s2129_s8, %s2179_s7 }
 0x2a5   : > { %p1697_p10 = scmp.lt.u32.totalorder %s1695_s19, %s1691_s14  ;;  %p1699_p12 = scmp.lt.u32.totalorder %s1691_s14, %s2129_s8 }
 0x2a6   : > { %p1693_p7 = pnand %p1692_p4, %p1821_p5 }
 0x2a7   : > { %p1698_p11 = por %p1697_p10, %p1696_p9 }
 0x2a8   : > { %p1694_p8 = pneg %p1693_p7 }
 0x2a9   : > { %p1700_p13 = por %p1699_p12, %p1698_p11 }
 0x2ab   : > { %p1701_p0 = pnand %p1700_p13, %p1694_p8 }
 0x2ad   : > { %1704 = shalt.err (!%p1701_p0)
}
 0x2ae   : > { %1571 = dma.vmem_to_hbm [thread:$0]  (%p1821_p5), %s2131_s22, 128, %s2129_s8, %s1314_s9  }
 0x2af PF: > { %p1577_p1 = scmp.ge.s32.totalorder %s1739_s27, 2  ;;  %s1339_s23 = sand.u32 1, %s1727_s24  }
 0x2b0   : > { %s1340_s29 = scalar_lea.sflag [#allocation3], %s1339_s23 }
 0x2b1   : > { %p1574_p2 = pnand %p1577_p1, %p1825_p6 }
 0x2b3   : > { %1722 = dma.done.wait (!%p1574_p2), %s1340_s29, 128  }
 0x2b4   : > { %1724 = vsyncadd (!%p1574_p2), %s1340_s29, 4294967168  ;;  %p17_p3 = scmp.ge.s32.totalorder %s1808_s30, 4   ;;  %s2182_s24 = smov %s1731_s25 }
 0x2b5   : > { %s2183_s25 = smov %s1735_s26  ;;  %s2184_s26 = smov %s1819_s10 }
 0x2b6   : > { %s2185_s27 = smov %s1808_s30  ;;  %19 = sbr.rel (!%p17_p3) target bundleno = 3 (0x3), region = 83 }
 0x2bd   :  { %1345 = vsyncpa [#allocation3], 1 }
 0x2be   :  { %1347 = vsyncpa [#allocation3 + $0x1], 1 }

</bundles_post_ra>
